<compile_context>
chip_gen: v7x
topology: tpu7x:2x2x1
jax: 0.10.0
libtpu: 0.0.40
codegen_flags: <defaults>
</compile_context>

<pallas_src>
import functools

import jax
import jax.numpy as jnp
from jax import lax
from jax.experimental import pallas as pl
from jax.experimental.pallas import tpu as pltpu


C_OUT = 3
K = 3  # kernel size


def conv3x3_flat_kernel(w_ref, b_ref, x_ref, o_ref, pad_ref, *, H, W, PAD):
    # w_ref:   (27,) f32 SMEM, layout oc*9 + kh*3 + kw
    # b_ref:   (3,)  f32 SMEM
    # x_ref:   (BB, 1, P) f32 VMEM  -- unpadded flattened images, P = H*W
    # o_ref:   (BB, C_OUT, P) f32 VMEM
    # pad_ref: (BB, PAD + P + PAD) f32 VMEM scratch -- flattened row + zero halo
    bb, _, P = x_ref.shape

    # Build the zero-padded flattened row in VMEM (interior store is
    # lane-aligned since PAD is a multiple of 128).  Zeroing the halo every
    # step keeps this correct under any megacore scheduling of the grid.
    zeros_halo = jnp.zeros((bb, PAD), jnp.float32)
    pad_ref[:, :PAD] = zeros_halo
    pad_ref[:, PAD + P:] = zeros_halo
    pad_ref[:, PAD:PAD + P] = x_ref[:, 0, :]
    xp = pad_ref[...]                                   # (BB, 2*PAD + P)

    # Column masks for the two horizontal taps.  Row (vertical) taps that fall
    # outside the image map into the zero halo of the flattened row, so they
    # need no mask; the corner cases are covered by the column masks.
    col = lax.broadcasted_iota(jnp.int32, (bb, P), 1) % W
    col_ok = {-1: col >= 1, 0: None, 1: col <= W - 2}

    # Bias-initialized accumulators, one per output channel.
    acc = [jnp.full((bb, P), b_ref[oc], jnp.float32) for oc in range(C_OUT)]

    # 9 taps: build each shifted window once, reuse it for all 3 channels.
    for kh in range(K):
        dh = kh - 1
        for kw in range(K):
            dw = kw - 1
            off = dh * W + dw                           # flattened neighbor offset
            win = xp[:, PAD + off:PAD + off + P]        # win[p] = xpad[p + off]
            if col_ok[dw] is not None:
                win = jnp.where(col_ok[dw], win, 0.0)
            for oc in range(C_OUT):
                acc[oc] = acc[oc] + win * w_ref[oc * K * K + kh * K + kw]

    # Lane-dense stores: last dim is P = H*W (256 = 2 full lane tiles here).
    for oc in range(C_OUT):
        o_ref[:, oc, :] = acc[oc]


def _pick_block_batch(n, p):
    # Fold several images into one grid step to amortize the ~0.35us per-step
    # pipeline overhead, but keep >= 2 grid steps so both v7x TensorCores get
    # work, and cap the block so double-buffered VMEM blocks stay small.
    vmem_cap = max(1, (8 * 1024 * 1024) // (2 * (1 + C_OUT) * p * 4))
    bb = max(1, min(n // 2, vmem_cap)) if n >= 2 else 1
    while n % bb:
        bb -= 1
    return bb


def prenn_forward(x_nchw, weight, bias):
    """Conv2d(1, 3, kernel_size=3, stride=1, padding=1) forward.

    x_nchw: (N, 1, H, W) f32, weight: (3, 1, 3, 3) f32, bias: (3,) f32
    returns (N, 3, H, W) f32.
    """
    N, C_in, H, W = x_nchw.shape
    assert C_in == 1
    P = H * W
    PAD = pl.cdiv(W + 1, 128) * 128        # lane-aligned in-kernel zero halo
    bb = _pick_block_batch(N, P)

    x_flat = x_nchw.reshape(N, 1, P)       # free reshape; NO jnp.pad pre-pass
    w_flat = weight.reshape(C_OUT * K * K) # 1-D SMEM layout (no padding blowup)

    out_flat = pl.pallas_call(
        functools.partial(conv3x3_flat_kernel, H=H, W=W, PAD=PAD),
        out_shape=jax.ShapeDtypeStruct((N, C_OUT, P), jnp.float32),
        grid_spec=pltpu.PrefetchScalarGridSpec(
            num_scalar_prefetch=0,
            grid=(N // bb,),
            in_specs=[
                pl.BlockSpec(memory_space=pltpu.MemorySpace.SMEM),  # weight (27,)
                pl.BlockSpec(memory_space=pltpu.MemorySpace.SMEM),  # bias (3,)
                pl.BlockSpec((bb, 1, P), lambda i: (i, 0, 0)),      # images
            ],
            out_specs=pl.BlockSpec((bb, C_OUT, P), lambda i: (i, 0, 0)),
            scratch_shapes=[pltpu.VMEM((bb, 2 * PAD + P), jnp.float32)],
        ),
        compiler_params=pltpu.CompilerParams(
            dimension_semantics=("parallel",),
        ),
    )(w_flat, bias, x_flat)

    return out_flat.reshape(N, C_OUT, H, W)


def _reference_conv(x_nchw, weight, bias):
    # Pure-JAX reference (NCHW conv, stride 1, padding 1) for a sanity check.
    out = jax.lax.conv_general_dilated(
        x_nchw, weight,
        window_strides=(1, 1),
        padding=((1, 1), (1, 1)),
        dimension_numbers=("NCHW", "OIHW", "NCHW"),
    )
    return out + bias.reshape(1, C_OUT, 1, 1)


if __name__ == "__main__":
    key = jax.random.PRNGKey(0)
    k_x, k_w, k_b = jax.random.split(key, 3)

    # Small shapes consistent with the module's forward (N, C=1, H, W).
    N, H, W = 2, 16, 16
    x = jax.random.normal(k_x, (N, 1, H, W), dtype=jnp.float32)

    # Deterministic Conv2d(1, 3, 3) parameters, PyTorch-default-style init.
    fan_in = 1 * K * K
    bound = 1.0 / float(fan_in) ** 0.5
    weight = jax.random.uniform(k_w, (C_OUT, 1, K, K), jnp.float32, -bound, bound)
    bias = jax.random.uniform(k_b, (C_OUT,), jnp.float32, -bound, bound)

    y = prenn_forward(x, weight, bias)
    y = jax.block_until_ready(y)

    y_ref = _reference_conv(x, weight, bias)
    assert y.shape == (N, C_OUT, H, W)
    assert jnp.allclose(y, y_ref, atol=1e-5, rtol=1e-5)

    print("KERNEL_OK")
</pallas_src>

<mosaic_0001>
module attributes {stable_mosaic.version = 11 : i64} {
  func.func @conv3x3_flat_kernel(%arg0: i32, %arg1: memref<27xf32, #tpu.memory_space<smem>>, %arg2: memref<3xf32, #tpu.memory_space<smem>>, %arg3: memref<1x1x256xf32, #tpu.memory_space<vmem>>, %arg4: memref<1x3x256xf32, #tpu.memory_space<vmem>>, %arg5: memref<1x512xf32, #tpu.memory_space<vmem>>) attributes {dimension_semantics = [#tpu.dimension_semantics<parallel>], iteration_bounds = array<i64: 2>, scalar_prefetch = 0 : i64, scratch_operands = 1 : i64, tpu.core_type = #tpu.core_type<tc>, window_params = [{transform_indices = @transform_0, window_bounds = array<i64: 27>}, {transform_indices = @transform_1, window_bounds = array<i64: 3>}, {transform_indices = @transform_2, window_bounds = array<i64: 1, 1, 256>}, {transform_indices = @transform_3, window_bounds = array<i64: 1, 3, 256>}]} {
    %cst = arith.constant 0.000000e+00 : f32
    %0 = vector.broadcast %cst : f32 to vector<1x128xf32>
    %c0 = arith.constant 0 : index
    %c0_0 = arith.constant 0 : index
    %1 = vector.load %arg5[%c0, %c0_0] : memref<1x512xf32, #tpu.memory_space<vmem>>, vector<1x128xf32>
    tpu.vector_store %arg5[%c0, %c0_0], %0 {strides = array<i32>} : memref<1x512xf32, #tpu.memory_space<vmem>>, vector<1x128xf32>,
    %c0_1 = arith.constant 0 : index
    %c384 = arith.constant 384 : index
    %2 = vector.load %arg5[%c0_1, %c384] : memref<1x512xf32, #tpu.memory_space<vmem>>, vector<1x128xf32>
    tpu.vector_store %arg5[%c0_1, %c384], %0 {strides = array<i32>} : memref<1x512xf32, #tpu.memory_space<vmem>>, vector<1x128xf32>,
    %c0_2 = arith.constant 0 : index
    %c0_3 = arith.constant 0 : index
    %c0_4 = arith.constant 0 : index
    %3 = vector.load %arg3[%c0_2, %c0_3, %c0_4] : memref<1x1x256xf32, #tpu.memory_space<vmem>>, vector<1x1x256xf32>
    %4 = vector.shape_cast %3 : vector<1x1x256xf32> to vector<1x256xf32>
    %c0_5 = arith.constant 0 : index
    %c128 = arith.constant 128 : index
    %5 = vector.load %arg5[%c0_5, %c128] : memref<1x512xf32, #tpu.memory_space<vmem>>, vector<1x256xf32>
    tpu.vector_store %arg5[%c0_5, %c128], %4 {strides = array<i32>} : memref<1x512xf32, #tpu.memory_space<vmem>>, vector<1x256xf32>,
    %c0_6 = arith.constant 0 : index
    %c0_7 = arith.constant 0 : index
    %6 = vector.load %arg5[%c0_6, %c0_7] : memref<1x512xf32, #tpu.memory_space<vmem>>, vector<1x512xf32>
    %7 = tpu.iota {dimensions = array<i32: 1>} : vector<1x256xi32>
    %c16_i32 = arith.constant 16 : i32
    %c0_i32 = arith.constant 0 : i32
    %8 = arith.cmpi eq, %c16_i32, %c0_i32 : i32
    %c1_i32 = arith.constant 1 : i32
    %9 = arith.select %8, %c1_i32, %c16_i32 : i32
    %10 = vector.broadcast %9 : i32 to vector<1x256xi32>
    %11 = arith.remsi %7, %10 : vector<1x256xi32>
    %c0_i32_8 = arith.constant 0 : i32
    %12 = vector.broadcast %c0_i32_8 : i32 to vector<1x256xi32>
    %13 = arith.cmpi ne, %11, %12 : vector<1x256xi32>
    %c0_i32_9 = arith.constant 0 : i32
    %14 = vector.broadcast %c0_i32_9 : i32 to vector<1x256xi32>
    %15 = arith.cmpi slt, %11, %14 : vector<1x256xi32>
    %c0_i32_10 = arith.constant 0 : i32
    %16 = arith.cmpi slt, %9, %c0_i32_10 : i32
    %17 = vector.broadcast %16 : i1 to vector<1x256xi1>
    %18 = vector.broadcast %17 : vector<1x256xi1> to vector<1x256xi1>
    %19 = arith.xori %15, %18 : vector<1x256xi1>
    %20 = arith.andi %19, %13 : vector<1x256xi1>
    %21 = vector.broadcast %9 : i32 to vector<1x256xi32>
    %22 = arith.addi %11, %21 : vector<1x256xi32>
    %23 = arith.select %20, %22, %11 : vector<1x256xi1>, vector<1x256xi32>
    %c1_i32_11 = arith.constant 1 : i32
    %24 = vector.broadcast %c1_i32_11 : i32 to vector<1x256xi32>
    %25 = arith.cmpi sge, %23, %24 : vector<1x256xi32>
    %c14_i32 = arith.constant 14 : i32
    %26 = vector.broadcast %c14_i32 : i32 to vector<1x256xi32>
    %27 = arith.cmpi sle, %23, %26 : vector<1x256xi32>
    %c0_12 = arith.constant 0 : index
    %28 = memref.load %arg2[%c0_12] : memref<3xf32, #tpu.memory_space<smem>>
    %29 = vector.broadcast %28 : f32 to vector<1x256xf32>
    %c1 = arith.constant 1 : index
    %30 = memref.load %arg2[%c1] : memref<3xf32, #tpu.memory_space<smem>>
    %31 = vector.broadcast %30 : f32 to vector<1x256xf32>
    %c2 = arith.constant 2 : index
    %32 = memref.load %arg2[%c2] : memref<3xf32, #tpu.memory_space<smem>>
    %33 = vector.broadcast %32 : f32 to vector<1x256xf32>
    %34 = vector.extract_strided_slice %6 {offsets = [0, 111], sizes = [1, 256], strides = [1, 1]} : vector<1x512xf32> to vector<1x256xf32>
    %cst_13 = arith.constant 0.000000e+00 : f32
    %35 = vector.broadcast %cst_13 : f32 to vector<1x256xf32>
    %36 = arith.select %25, %34, %35 : vector<1x256xi1>, vector<1x256xf32>
    %c0_14 = arith.constant 0 : index
    %37 = memref.load %arg1[%c0_14] : memref<27xf32, #tpu.memory_space<smem>>
    %38 = vector.broadcast %37 : f32 to vector<1x256xf32>
    %39 = arith.mulf %36, %38 : vector<1x256xf32>
    %40 = arith.addf %29, %39 : vector<1x256xf32>
    %c9 = arith.constant 9 : index
    %41 = memref.load %arg1[%c9] : memref<27xf32, #tpu.memory_space<smem>>
    %42 = vector.broadcast %41 : f32 to vector<1x256xf32>
    %43 = arith.mulf %36, %42 : vector<1x256xf32>
    %44 = arith.addf %31, %43 : vector<1x256xf32>
    %c18 = arith.constant 18 : index
    %45 = memref.load %arg1[%c18] : memref<27xf32, #tpu.memory_space<smem>>
    %46 = vector.broadcast %45 : f32 to vector<1x256xf32>
    %47 = arith.mulf %36, %46 : vector<1x256xf32>
    %48 = arith.addf %33, %47 : vector<1x256xf32>
    %49 = vector.extract_strided_slice %6 {offsets = [0, 112], sizes = [1, 256], strides = [1, 1]} : vector<1x512xf32> to vector<1x256xf32>
    %c1_15 = arith.constant 1 : index
    %50 = memref.load %arg1[%c1_15] : memref<27xf32, #tpu.memory_space<smem>>
    %51 = vector.broadcast %50 : f32 to vector<1x256xf32>
    %52 = arith.mulf %49, %51 : vector<1x256xf32>
    %53 = arith.addf %40, %52 : vector<1x256xf32>
    %c10 = arith.constant 10 : index
    %54 = memref.load %arg1[%c10] : memref<27xf32, #tpu.memory_space<smem>>
    %55 = vector.broadcast %54 : f32 to vector<1x256xf32>
    %56 = arith.mulf %49, %55 : vector<1x256xf32>
    %57 = arith.addf %44, %56 : vector<1x256xf32>
    %c19 = arith.constant 19 : index
    %58 = memref.load %arg1[%c19] : memref<27xf32, #tpu.memory_space<smem>>
    %59 = vector.broadcast %58 : f32 to vector<1x256xf32>
    %60 = arith.mulf %49, %59 : vector<1x256xf32>
    %61 = arith.addf %48, %60 : vector<1x256xf32>
    %62 = vector.extract_strided_slice %6 {offsets = [0, 113], sizes = [1, 256], strides = [1, 1]} : vector<1x512xf32> to vector<1x256xf32>
    %cst_16 = arith.constant 0.000000e+00 : f32
    %63 = vector.broadcast %cst_16 : f32 to vector<1x256xf32>
    %64 = arith.select %27, %62, %63 : vector<1x256xi1>, vector<1x256xf32>
    %c2_17 = arith.constant 2 : index
    %65 = memref.load %arg1[%c2_17] : memref<27xf32, #tpu.memory_space<smem>>
    %66 = vector.broadcast %65 : f32 to vector<1x256xf32>
    %67 = arith.mulf %64, %66 : vector<1x256xf32>
    %68 = arith.addf %53, %67 : vector<1x256xf32>
    %c11 = arith.constant 11 : index
    %69 = memref.load %arg1[%c11] : memref<27xf32, #tpu.memory_space<smem>>
    %70 = vector.broadcast %69 : f32 to vector<1x256xf32>
    %71 = arith.mulf %64, %70 : vector<1x256xf32>
    %72 = arith.addf %57, %71 : vector<1x256xf32>
    %c20 = arith.constant 20 : index
    %73 = memref.load %arg1[%c20] : memref<27xf32, #tpu.memory_space<smem>>
    %74 = vector.broadcast %73 : f32 to vector<1x256xf32>
    %75 = arith.mulf %64, %74 : vector<1x256xf32>
    %76 = arith.addf %61, %75 : vector<1x256xf32>
    %77 = vector.extract_strided_slice %6 {offsets = [0, 127], sizes = [1, 256], strides = [1, 1]} : vector<1x512xf32> to vector<1x256xf32>
    %cst_18 = arith.constant 0.000000e+00 : f32
    %78 = vector.broadcast %cst_18 : f32 to vector<1x256xf32>
    %79 = arith.select %25, %77, %78 : vector<1x256xi1>, vector<1x256xf32>
    %c3 = arith.constant 3 : index
    %80 = memref.load %arg1[%c3] : memref<27xf32, #tpu.memory_space<smem>>
    %81 = vector.broadcast %80 : f32 to vector<1x256xf32>
    %82 = arith.mulf %79, %81 : vector<1x256xf32>
    %83 = arith.addf %68, %82 : vector<1x256xf32>
    %c12 = arith.constant 12 : index
    %84 = memref.load %arg1[%c12] : memref<27xf32, #tpu.memory_space<smem>>
    %85 = vector.broadcast %84 : f32 to vector<1x256xf32>
    %86 = arith.mulf %79, %85 : vector<1x256xf32>
    %87 = arith.addf %72, %86 : vector<1x256xf32>
    %c21 = arith.constant 21 : index
    %88 = memref.load %arg1[%c21] : memref<27xf32, #tpu.memory_space<smem>>
    %89 = vector.broadcast %88 : f32 to vector<1x256xf32>
    %90 = arith.mulf %79, %89 : vector<1x256xf32>
    %91 = arith.addf %76, %90 : vector<1x256xf32>
    %92 = vector.extract_strided_slice %6 {offsets = [0, 128], sizes = [1, 256], strides = [1, 1]} : vector<1x512xf32> to vector<1x256xf32>
    %c4 = arith.constant 4 : index
    %93 = memref.load %arg1[%c4] : memref<27xf32, #tpu.memory_space<smem>>
    %94 = vector.broadcast %93 : f32 to vector<1x256xf32>
    %95 = arith.mulf %92, %94 : vector<1x256xf32>
    %96 = arith.addf %83, %95 : vector<1x256xf32>
    %c13 = arith.constant 13 : index
    %97 = memref.load %arg1[%c13] : memref<27xf32, #tpu.memory_space<smem>>
    %98 = vector.broadcast %97 : f32 to vector<1x256xf32>
    %99 = arith.mulf %92, %98 : vector<1x256xf32>
    %100 = arith.addf %87, %99 : vector<1x256xf32>
    %c22 = arith.constant 22 : index
    %101 = memref.load %arg1[%c22] : memref<27xf32, #tpu.memory_space<smem>>
    %102 = vector.broadcast %101 : f32 to vector<1x256xf32>
    %103 = arith.mulf %92, %102 : vector<1x256xf32>
    %104 = arith.addf %91, %103 : vector<1x256xf32>
    %105 = vector.extract_strided_slice %6 {offsets = [0, 129], sizes = [1, 256], strides = [1, 1]} : vector<1x512xf32> to vector<1x256xf32>
    %cst_19 = arith.constant 0.000000e+00 : f32
    %106 = vector.broadcast %cst_19 : f32 to vector<1x256xf32>
    %107 = arith.select %27, %105, %106 : vector<1x256xi1>, vector<1x256xf32>
    %c5 = arith.constant 5 : index
    %108 = memref.load %arg1[%c5] : memref<27xf32, #tpu.memory_space<smem>>
    %109 = vector.broadcast %108 : f32 to vector<1x256xf32>
    %110 = arith.mulf %107, %109 : vector<1x256xf32>
    %111 = arith.addf %96, %110 : vector<1x256xf32>
    %c14 = arith.constant 14 : index
    %112 = memref.load %arg1[%c14] : memref<27xf32, #tpu.memory_space<smem>>
    %113 = vector.broadcast %112 : f32 to vector<1x256xf32>
    %114 = arith.mulf %107, %113 : vector<1x256xf32>
    %115 = arith.addf %100, %114 : vector<1x256xf32>
    %c23 = arith.constant 23 : index
    %116 = memref.load %arg1[%c23] : memref<27xf32, #tpu.memory_space<smem>>
    %117 = vector.broadcast %116 : f32 to vector<1x256xf32>
    %118 = arith.mulf %107, %117 : vector<1x256xf32>
    %119 = arith.addf %104, %118 : vector<1x256xf32>
    %120 = vector.extract_strided_slice %6 {offsets = [0, 143], sizes = [1, 256], strides = [1, 1]} : vector<1x512xf32> to vector<1x256xf32>
    %cst_20 = arith.constant 0.000000e+00 : f32
    %121 = vector.broadcast %cst_20 : f32 to vector<1x256xf32>
    %122 = arith.select %25, %120, %121 : vector<1x256xi1>, vector<1x256xf32>
    %c6 = arith.constant 6 : index
    %123 = memref.load %arg1[%c6] : memref<27xf32, #tpu.memory_space<smem>>
    %124 = vector.broadcast %123 : f32 to vector<1x256xf32>
    %125 = arith.mulf %122, %124 : vector<1x256xf32>
    %126 = arith.addf %111, %125 : vector<1x256xf32>
    %c15 = arith.constant 15 : index
    %127 = memref.load %arg1[%c15] : memref<27xf32, #tpu.memory_space<smem>>
    %128 = vector.broadcast %127 : f32 to vector<1x256xf32>
    %129 = arith.mulf %122, %128 : vector<1x256xf32>
    %130 = arith.addf %115, %129 : vector<1x256xf32>
    %c24 = arith.constant 24 : index
    %131 = memref.load %arg1[%c24] : memref<27xf32, #tpu.memory_space<smem>>
    %132 = vector.broadcast %131 : f32 to vector<1x256xf32>
    %133 = arith.mulf %122, %132 : vector<1x256xf32>
    %134 = arith.addf %119, %133 : vector<1x256xf32>
    %135 = vector.extract_strided_slice %6 {offsets = [0, 144], sizes = [1, 256], strides = [1, 1]} : vector<1x512xf32> to vector<1x256xf32>
    %c7 = arith.constant 7 : index
    %136 = memref.load %arg1[%c7] : memref<27xf32, #tpu.memory_space<smem>>
    %137 = vector.broadcast %136 : f32 to vector<1x256xf32>
    %138 = arith.mulf %135, %137 : vector<1x256xf32>
    %139 = arith.addf %126, %138 : vector<1x256xf32>
    %c16 = arith.constant 16 : index
    %140 = memref.load %arg1[%c16] : memref<27xf32, #tpu.memory_space<smem>>
    %141 = vector.broadcast %140 : f32 to vector<1x256xf32>
    %142 = arith.mulf %135, %141 : vector<1x256xf32>
    %143 = arith.addf %130, %142 : vector<1x256xf32>
    %c25 = arith.constant 25 : index
    %144 = memref.load %arg1[%c25] : memref<27xf32, #tpu.memory_space<smem>>
    %145 = vector.broadcast %144 : f32 to vector<1x256xf32>
    %146 = arith.mulf %135, %145 : vector<1x256xf32>
    %147 = arith.addf %134, %146 : vector<1x256xf32>
    %148 = vector.extract_strided_slice %6 {offsets = [0, 145], sizes = [1, 256], strides = [1, 1]} : vector<1x512xf32> to vector<1x256xf32>
    %cst_21 = arith.constant 0.000000e+00 : f32
    %149 = vector.broadcast %cst_21 : f32 to vector<1x256xf32>
    %150 = arith.select %27, %148, %149 : vector<1x256xi1>, vector<1x256xf32>
    %c8 = arith.constant 8 : index
    %151 = memref.load %arg1[%c8] : memref<27xf32, #tpu.memory_space<smem>>
    %152 = vector.broadcast %151 : f32 to vector<1x256xf32>
    %153 = arith.mulf %150, %152 : vector<1x256xf32>
    %154 = arith.addf %139, %153 : vector<1x256xf32>
    %c17 = arith.constant 17 : index
    %155 = memref.load %arg1[%c17] : memref<27xf32, #tpu.memory_space<smem>>
    %156 = vector.broadcast %155 : f32 to vector<1x256xf32>
    %157 = arith.mulf %150, %156 : vector<1x256xf32>
    %158 = arith.addf %143, %157 : vector<1x256xf32>
    %c26 = arith.constant 26 : index
    %159 = memref.load %arg1[%c26] : memref<27xf32, #tpu.memory_space<smem>>
    %160 = vector.broadcast %159 : f32 to vector<1x256xf32>
    %161 = arith.mulf %150, %160 : vector<1x256xf32>
    %162 = arith.addf %147, %161 : vector<1x256xf32>
    %c0_22 = arith.constant 0 : index
    %c0_23 = arith.constant 0 : index
    %c0_24 = arith.constant 0 : index
    %163 = vector.load %arg4[%c0_22, %c0_23, %c0_24] : memref<1x3x256xf32, #tpu.memory_space<vmem>>, vector<1x1x256xf32>
    %164 = vector.shape_cast %163 : vector<1x1x256xf32> to vector<1x256xf32>
    %165 = vector.shape_cast %154 : vector<1x256xf32> to vector<1x1x256xf32>
    tpu.vector_store %arg4[%c0_22, %c0_23, %c0_24], %165 {strides = array<i32>} : memref<1x3x256xf32, #tpu.memory_space<vmem>>, vector<1x1x256xf32>,
    %c0_25 = arith.constant 0 : index
    %c1_26 = arith.constant 1 : index
    %c0_27 = arith.constant 0 : index
    %166 = vector.load %arg4[%c0_25, %c1_26, %c0_27] : memref<1x3x256xf32, #tpu.memory_space<vmem>>, vector<1x1x256xf32>
    %167 = vector.shape_cast %166 : vector<1x1x256xf32> to vector<1x256xf32>
    %168 = vector.shape_cast %158 : vector<1x256xf32> to vector<1x1x256xf32>
    tpu.vector_store %arg4[%c0_25, %c1_26, %c0_27], %168 {strides = array<i32>} : memref<1x3x256xf32, #tpu.memory_space<vmem>>, vector<1x1x256xf32>,
    %c0_28 = arith.constant 0 : index
    %c2_29 = arith.constant 2 : index
    %c0_30 = arith.constant 0 : index
    %169 = vector.load %arg4[%c0_28, %c2_29, %c0_30] : memref<1x3x256xf32, #tpu.memory_space<vmem>>, vector<1x1x256xf32>
    %170 = vector.shape_cast %169 : vector<1x1x256xf32> to vector<1x256xf32>
    %171 = vector.shape_cast %162 : vector<1x256xf32> to vector<1x1x256xf32>
    tpu.vector_store %arg4[%c0_28, %c2_29, %c0_30], %171 {strides = array<i32>} : memref<1x3x256xf32, #tpu.memory_space<vmem>>, vector<1x1x256xf32>,
    return
  }
  func.func @transform_0(%arg0: i32) -> i32 {
    %c0_i32 = arith.constant 0 : i32
    %c0_i32_0 = arith.constant 0 : i32
    return %c0_i32 : i32
  }
  func.func @transform_1(%arg0: i32) -> i32 {
    %c0_i32 = arith.constant 0 : i32
    %c0_i32_0 = arith.constant 0 : i32
    return %c0_i32 : i32
  }
  func.func @transform_2(%arg0: i32) -> (i32, i32, i32) {
    %c0_i32 = arith.constant 0 : i32
    %c0_i32_0 = arith.constant 0 : i32
    %c0_i32_1 = arith.constant 0 : i32
    return %arg0, %c0_i32, %c0_i32_0 : i32, i32, i32
  }
  func.func @transform_3(%arg0: i32) -> (i32, i32, i32) {
    %c0_i32 = arith.constant 0 : i32
    %c0_i32_0 = arith.constant 0 : i32
    %c0_i32_1 = arith.constant 0 : i32
    return %arg0, %c0_i32, %c0_i32_0 : i32, i32, i32
  }
}

</mosaic_0001>

<bundles_post_ra>
// kernel: tpu_custom_call.1
= control target key start
LH: loop header
LB: loop body
LE: loop exit
PB: predicated region body
PF: predicated region fallthrough
CT: control target
= control target key end

     0   :  { %8 = vsyncpa [#allocation4], 0  ;;  %s1272_s0 = inlined_call_operand.hbm [shape: f32[27], index: 0, kind: input, shape index: {}]   ;;  %s1273_s1 = inlined_call_operand.vmem [shape: f32[3], index: 1, kind: input, shape index: {}]   ;;  %s1274_s2 = inlined_call_operand.vmem [shape: f32[2,1,256], index: 2, kind: input, shape index: {}]   ;;  %s1275_s3 = inlined_call_operand.vmem [shape: f32[2,3,256], index: 3, kind: output, shape index: {}]  }
   0x1   :  { %9 = vsyncpa [#allocation5], 0  ;;  %s932_s12 = smov 0  }
   0x2 LB: > { %s938_s13 = sadd.s32 4294967295, %s898_s12   ;;  %p774_p0 = scmp.ge.s32.totalorder %s898_s12, 1  ;;  %s898_s12 = sphi %s932_s12, %s15_s12  }
   0x3   : > { %p114_p1 = scmp.lt.s32.totalorder %s898_s12, 3  ;;  %p832_p3 = scmp.eq.s32.totalorder %s938_s13, 0 }
   0x4   : > { %s136_s17 = sshll.u32 %s1273_s1, 4  ;;  %s856_s21 = scalar_lea.hbm %s1272_s0, 16  ;;  %s137_s17 = int_to_ptr.vmem [resolvable:$true] %s136_s17 }
   0x5   : > { %p942_p2 = pnand %p774_p0, %p114_p1  ;;  %p857_p6 = scmp.ne.s32.totalorder %s1272_s0, %s856_s21 }
   0x6   : > { %p863_p10 = scmp.lt.u32.totalorder %s856_s21, %s1272_s0 }
   0x7   : > { %p825_p4 = pneg %p942_p2 }
   0x9   : > { %p954_p5 = pnand %p832_p3, %p825_p4 }
   0xb   : > { %p858_p7 = pneg %p954_p5 }
   0xd   : > { %p859_p8 = pnand %p858_p7, %p857_p6 }
   0xf   : > { %p860_p9 = pneg %p859_p8 }
  0x11   : > { %p865_p11 = pnand %p863_p10, %p860_p9 }
  0x13   : > { %868 = shalt.err (!%p865_p11)
}
  0x14   : > { %s900_s26 = smov [#allocation3]   ;;  %s869_s29 = scalar_lea.vmem %s137_s17, 16 }
  0x15   : > { %828 = dma.hbm_to_smem (!%p954_p5), %s1272_s0, 16, %s900_s26, [#allocation4]  }
  0x16   : > { %p870_p12 = scmp.ne.s32.totalorder %s137_s17, %s869_s29  ;;  %p877_p1 = scmp.lt.s32.totalorder %s137_s17, %s137_s17 }
  0x17   : > { %p878_p4 = scmp.lt.s32.totalorder %s869_s29, %s869_s29 }
  0x18   : > { %p872_p13 = pnand %p870_p12, %p858_p7 }
  0x19   : > { %p879_p6 = por %p878_p4, %p877_p1 }
  0x1a   : > { %p873_p0 = pneg %p872_p13 }
  0x1c   : > { %p880_p8 = pnand %p879_p6, %p873_p0 }
  0x1e   : > { %883 = shalt.err (!%p880_p8)
}
  0x1f   : > { %s901_s30 = smov [#allocation6]   ;;  %156 = sbr.rel (%p942_p2) target bundleno = 241 (0xf1), region = 32 }
  0x20   : > { %831 = dma.vmem_to_smem (!%p954_p5), %s137_s17, 16, %s901_s30, [#allocation5]  }
  0x26   : > { %889 = dma.done.wait (%p832_p3), [#allocation4], 16  }
  0x27   : > { %891 = vsyncadd (%p832_p3), [#allocation4], 4294967280 }
  0x28   : > { %893 = dma.done.wait (%p832_p3), [#allocation5], 16  }
  0x29   : > { %895 = vsyncadd (%p832_p3), [#allocation5], 4294967280 }
  0x2a   : > { %166 = sfence }
  0x2b   : > { %p184_p7 = scmp.lt.s32.totalorder %s938_s13, 1  ;;  %v193_v0 = vlaneseq  ;;  %v902_v1 = vmov 0.0   ;;  %s788_s8 = sld [smem:[#allocation3 + $0x1]]  ;;  %vm260_vm2 = vcmask 138240   ;;  %vm376_vm5 = vcmask 121856  }
  0x2c   : > { %s789_s9 = sld [smem:[#allocation3 + $0xa]]  ;;  %s903_s10 = smov 17   ;;  %vm307_vm8 = vcmask 130048   ;;  %vm407_vm9 = vcmask 7168   ;;  %vm492_vm10 = vcmask 1039360   ;;  %vm554_vm11 = vcmask 916480  }
  0x2d   : > { %s1289_s13 = smov (!%p184_p7, %s938_s13), 1  ;;  %vm195_vm0 = vcmp.lt.s32.totalorder %v193_v0, 128  ;;  %vm993_vm1 = vcmp.lt.s32.totalorder %v193_v0, 256  ;;  %v1003_v4 = vshrl.u32 %v193_v0, 7  ;;  %s904_s11 = smov 15   ;;  %v205_v32 = vand.u32 127, %v193_v0 }
  0x2e   : > { %197 = vst.msk [vmem:[#allocation2] sm:$0x1] %vm195_vm0, %v902_v1  ;;  %198 = vst.msk [vmem:[#allocation2 + $0x3] sm:$0x1] %vm195_vm0, %v902_v1  ;;  %s781_s4 = sshll.u32 %s1289_s13, 1  ;;  %s790_s14 = sld [smem:[#allocation3 + $0x13]] }
  0x2f   : > { %s187_s7 = scalar_lea.vmem %s1274_s2, %s781_s4  ;;  %v1006_v5 = vsub.s32 0, %v1003_v4  ;;  %v252_v6 = vsub.s32 2, %v1003_v4  ;;  %v1010_v7 = vsub.s32 1, %v1003_v4  ;;  %s905_s15 = smov 16   ;;  %v484_v27 = vsub.s32 3, %v1003_v4 }
  0x30   : > { %v199_v3 = vld [vmem:[%s187_s7] sm:$0x3]  ;;  %s906_s16 = smov 1   ;;  %s907_s17 = smov 127   ;;  %v206_v34 = vadd.s32 128, %v205_v32  ;;  %v211_v37 = vand.u32 15, %v205_v32 }
  0x31   : > { %202 = vst.msk [vmem:[#allocation2 + $0x1] sm:$0x3] %vm993_vm1, %v199_v3  ;;  %v286_v12 = vstv %s788_s8  ;;  %s908_s18 = smov 112   ;;  %s909_s19 = smov 113   ;;  %vm523_vm12 = vcmask 924672   ;;  %vm609_vm13 = vcmask 908288  }
  0x32   : > { %v315_v14 = vstv %s789_s9  ;;  %s910_s20 = smov 111   ;;  %s1034_s21 = sld [smem:[#allocation3]]  ;;  %v218_v38 = vand.u32 15, %v206_v34  ;;  %vm1077_vm3 = vcmp.ge.s32.totalorder %v211_v37, 1  ;;  %vm1094_vm6 = vcmp.le.s32.totalorder %v211_v37, 14 }
  0x33   : > { %s1036_s22 = sld [smem:[#allocation3 + $0x9]]  ;;  %s1038_s23 = sld [smem:[#allocation3 + $0x4]] }
  0x34   : > { %v343_v20 = vstv %s790_s14  ;;  %s1044_s24 = sld [smem:[#allocation3 + $0xd]]  ;;  %s1046_s25 = sld [smem:[#allocation3 + $0x16]]  ;;  %vm1082_vm4 = vcmp.ge.s32.totalorder %v218_v38, 1  ;;  %vm1098_vm7 = vcmp.le.s32.totalorder %v218_v38, 14 }
  0x35   : > { %s1048_s26 = sld [smem:[#allocation3 + $0x12]]  ;;  %s1052_s28 = sld [smem:[#allocation3 + $0xb]] }
  0x36   : > { %s1050_s27 = sld [smem:[#allocation3 + $0x2]]  ;;  %s1054_s29 = sld [smem:[#allocation3 + $0x14]] }
  0x37   : > { %s1056_s30 = sld [smem:[#allocation6]]  ;;  %s1058_s4 = sld [smem:[#allocation6 + $0x1]] }
  0x38   : > { %v1012_v8 = vld [vmem:[#allocation2] sm:$0xf]  ;;  %s1064_s5 = sld [smem:[#allocation6 + $0x2]]  ;;  %s1066_s6 = sld [smem:[#allocation3 + $0x3]]  ;;  %v268_v49 = vstv %s1034_s21 }
  0x39   : > { %v253_v9 = vrot.slane %v1012_v8, %v252_v6  ;;  %v245_v10 = vrot.slane %v1012_v8, %v1006_v5  ;;  %v249_v11 = vrot.slane %v1012_v8, %v1010_v7  ;;  %v287_v13 = vmul.f32 %v286_v12, %v1012_v8  ;;  %s1068_s7 = sld [smem:[#allocation3 + $0xc]]  ;;  %s1070_s8 = sld [smem:[#allocation3 + $0x15]] }
  0x3a   : > { %v316_v17 = vmul.f32 %v315_v14, %v1012_v8  ;;  %v344_v23 = vmul.f32 %v343_v20, %v1012_v8  ;;  %v485_v28 = vrot.slane %v1012_v8, %v484_v27  ;;  %v434_v41 = vrot.slane %v1012_v8, 1  ;;  %s1073_s9 = sld [smem:[#allocation3 + $0x5]]  ;;  %s1102_s14 = sld [smem:[#allocation3 + $0x7]] }
  0x3b   : > { %258 = vrot.lane.b32.xlu1 %v253_v9, %s903_s10  ;;  %254 = vrot.lane.b32.xlu0 %v245_v10, %s903_s10  ;;  %v296_v15 = vrot.slane %v287_v13, %v1010_v7  ;;  %v292_v16 = vrot.slane %v287_v13, %v1006_v5  ;;  %v300_v19 = vrot.slane %v287_v13, %v252_v6  ;;  %v433_v43 = vstv %s1038_s23  ;;  %s1201_s21 = sld [smem:[#allocation3 + $0x11]]  ;;  %s816_s23 = sshll.u32 %s1289_s13, 3 }
  0x3c   : > { %v321_v18 = vrot.slane %v316_v17, %v1006_v5  ;;  %v329_v21 = vrot.slane %v316_v17, %v252_v6  ;;  %v325_v22 = vrot.slane %v316_v17, %v1010_v7  ;;  %v353_v24 = vrot.slane %v344_v23, %v1010_v7 }
  0x3d   : > { %v349_v25 = vrot.slane %v344_v23, %v1006_v5  ;;  %v357_v26 = vrot.slane %v344_v23, %v252_v6  ;;  %v451_v47 = vstv %s1044_s24  ;;  %v467_v48 = vstv %s1046_s25 }
  0x3e   : > { %v274_v50 = vstv %s1036_s22  ;;  %v280_v55 = vstv %s1048_s26  ;;  %v384_v56 = vstv %s1050_s27  ;;  %v390_v57 = vstv %s1052_s28  ;;  %s1203_s22 = sld [smem:[#allocation3 + $0x1a]]  ;;  %s192_s26 = scalar_lea.vmem %s1275_s3, %s816_s23 }
  0x3f   : > { %370 = vrot.lane.b32.xlu1 %v245_v10, %s904_s11  ;;  %256 = vrot.lane.b32.xlu0 %v249_v11, %s903_s10  ;;  %s1075_s10 = sld [smem:[#allocation3 + $0xe]]  ;;  %v1107_v58 = vmul.f32 %v434_v41, %v433_v43  ;;  %v396_v59 = vstv %s1054_s29  ;;  %v236_v60 = vstv %s1056_s30  ;;  %v1111_v61 = vmul.f32 %v451_v47, %v434_v41 }
  0x40   : > { %v1113_v62 = vmul.f32 %v467_v48, %v434_v41  ;;  %v238_v3 = vstv %s1058_s4  ;;  %v500_v13 = vstv %s1073_s9 }
  0x41   : > { %v441_v12 = vrot.slane %v1107_v58, %v1006_v5 }
  0x43   : > { %374 = vrot.lane.b32.xlu1 %v253_v9, %s904_s11  ;;  %372 = vrot.lane.b32.xlu0 %v249_v11, %s904_s11  ;;  %s1088_s11 = sld [smem:[#allocation3 + $0x17]] }
  0x45   : > { %v506_v14 = vstv %s1075_s10 }
  0x47   : > { %303 = vrot.lane.b32.xlu1 %v296_v15, %s905_s15  ;;  %301 = vrot.lane.b32.xlu0 %v292_v16, %s905_s15  ;;  %v445_v15 = vrot.slane %v1107_v58, %v1010_v7 }
  0x4b   : > { %330 = vrot.lane.b32.xlu1 %v321_v18, %s905_s15  ;;  %305 = vrot.lane.b32.xlu0 %v300_v19, %s905_s15  ;;  %v457_v18 = vrot.slane %v1111_v61, %v1006_v5  ;;  %v473_v19 = vrot.slane %v1113_v62, %v1006_v5 }
  0x4f   : > { %334 = vrot.lane.b32.xlu1 %v329_v21, %s905_s15  ;;  %332 = vrot.lane.b32.xlu0 %v325_v22, %s905_s15 }
  0x53   : > { %360 = vrot.lane.b32.xlu1 %v353_v24, %s905_s15  ;;  %358 = vrot.lane.b32.xlu0 %v349_v25, %s905_s15  ;;  %v512_v24 = vstv %s1088_s11  ;;  %v461_v25 = vrot.slane %v1111_v61, %v1010_v7 }
  0x57   : > { %401 = vrot.lane.b32.xlu1 %v245_v10, %s906_s16  ;;  %362 = vrot.lane.b32.xlu0 %v357_v26, %s905_s15  ;;  %v421_v10 = vstv %s1068_s7  ;;  %s1173_s15 = sld [smem:[#allocation3 + $0x10]] }
  0x5b   : > { %405 = vrot.lane.b32.xlu1 %v253_v9, %s906_s16  ;;  %403 = vrot.lane.b32.xlu0 %v249_v11, %s906_s16  ;;  %s1175_s16 = sld [smem:[#allocation3 + $0x19]] }
  0x5f   : > { %488 = vrot.lane.b32.xlu1 %v253_v9, %s907_s17  ;;  %486 = vrot.lane.b32.xlu0 %v249_v11, %s907_s17 }
  0x63   : > { %550 = vrot.lane.b32.xlu1 %v1012_v8, %s908_s18  ;;  %490 = vrot.lane.b32.xlu0 %v485_v28, %s907_s17  ;;  %v240_v8 = vstv %s1064_s5  ;;  %s1181_s17 = sld [smem:[#allocation3 + $0x6]]  ;;  %s1183_s18 = sld [smem:[#allocation3 + $0xf]] }
  0x67   : > { %519 = vrot.lane.b32.xlu1 %v253_v9, %s909_s19  ;;  %517 = vrot.lane.b32.xlu0 %v249_v11, %s909_s19 }
  0x6b   : > { %603 = vrot.lane.b32.xlu1 %v249_v11, %s910_s20  ;;  %521 = vrot.lane.b32.xlu0 %v485_v28, %s909_s19  ;;  %v427_v11 = vstv %s1070_s8  ;;  %s1185_s19 = sld [smem:[#allocation3 + $0x18]] }
  0x6f   : > { %607 = vrot.lane.b32.xlu1 %v485_v28, %s910_s20  ;;  %605 = vrot.lane.b32.xlu0 %v253_v9, %s910_s20  ;;  %v415_v9 = vstv %s1066_s6  ;;  %v549_v28 = vstv %s1102_s14  ;;  %s1188_s20 = sld [smem:[#allocation3 + $0x8]] }
  0xad   : > { %v259_v29 = vpop.permute.xlu1 %258  ;;  %v255_v30 = vpop.permute.xlu0 %254 }
  0xb1   : > { %v1031_v31 = vpop.permute.xlu1 %370  ;;  %v257_v33 = vpop.permute.xlu0 %256 }
  0xb2   : > { %v261_v51 = vsel %vm260_vm2, %v255_v30, %v257_v33  ;;  %v262_v52 = vsel %vm260_vm2, %v257_v33, %v259_v29  ;;  %v477_v29 = vrot.slane %v1113_v62, %v1010_v7 }
  0xb3   : > { %v265_v63 = vsel %vm1077_vm3, %v261_v51, 0.0  ;;  %v266_v0 = vsel %vm1082_vm4, %v262_v52, 0.0 }
  0xb4   : > { %v269_v16 = vmul.f32 %v268_v49, %v265_v63  ;;  %v270_v17 = vmul.f32 %v268_v49, %v266_v0  ;;  %v275_v20 = vmul.f32 %v274_v50, %v265_v63  ;;  %v276_v21 = vmul.f32 %v274_v50, %v266_v0 }
  0xb5   : > { %v1040_v35 = vpop.permute.xlu1 %374  ;;  %v1042_v36 = vpop.permute.xlu0 %372  ;;  %v281_v30 = vmul.f32 %v280_v55, %v265_v63  ;;  %v282_v32 = vmul.f32 %v280_v55, %v266_v0 }
  0xb6   : > { %v377_v26 = vsel %vm376_vm5, %v1031_v31, %v1042_v36  ;;  %v378_v27 = vsel %vm376_vm5, %v1042_v36, %v1040_v35  ;;  %v271_v37 = vadd.f32 %v269_v16, %v236_v60  ;;  %v272_v38 = vadd.f32 %v270_v17, %v236_v60 }
  0xb7   : > { %v381_v35 = vsel %vm1094_vm6, %v377_v26, 0.0  ;;  %v382_v36 = vsel %vm1098_vm7, %v378_v27, 0.0  ;;  %v277_v43 = vadd.f32 %v275_v20, %v238_v3  ;;  %v278_v47 = vadd.f32 %v276_v21, %v238_v3 }
  0xb8   : > { %v283_v52 = vadd.f32 %v281_v30, %v240_v8  ;;  %v284_v55 = vadd.f32 %v282_v32, %v240_v8  ;;  %v385_v60 = vmul.f32 %v384_v56, %v381_v35  ;;  %v386_v63 = vmul.f32 %v384_v56, %v382_v36 }
  0xb9   : > { %v1060_v39 = vpop.permute.xlu1 %303  ;;  %v1062_v40 = vpop.permute.xlu0 %301  ;;  %v391_v0 = vmul.f32 %v390_v57, %v381_v35  ;;  %v398_v16 = vmul.f32 %v396_v59, %v382_v36 }
  0xba   : > { %v308_v33 = vsel %vm307_vm8, %v1062_v40, %v1060_v39 }
  0xbb   : > { %v312_v49 = vadd.f32 %v308_v33, %v271_v37 }
  0xbd   : > { %v331_v45 = vpop.permute.xlu1 %330  ;;  %v306_v46 = vpop.permute.xlu0 %305 }
  0xbe   : > { %v309_v34 = vsel %vm307_vm8, %v1060_v39, %v306_v46 }
  0xbf   : > { %v313_v50 = vadd.f32 %v309_v34, %v272_v38 }
  0xc1   : > { %v335_v1 = vpop.permute.xlu1 %334  ;;  %v333_v6 = vpop.permute.xlu0 %332 }
  0xc2   : > { %v336_v31 = vsel %vm307_vm8, %v331_v45, %v333_v6  ;;  %v337_v41 = vsel %vm307_vm8, %v333_v6, %v335_v1  ;;  %v392_v1 = vmul.f32 %v390_v57, %v382_v36  ;;  %v397_v6 = vmul.f32 %v396_v59, %v381_v35 }
  0xc3   : > { %v340_v45 = vadd.f32 %v336_v31, %v277_v43  ;;  %v341_v51 = vadd.f32 %v337_v41, %v278_v47 }
  0xc5   : > { %v361_v22 = vpop.permute.xlu1 %360  ;;  %v359_v23 = vpop.permute.xlu0 %358  ;;  %v393_v57 = vadd.f32 %v391_v0, %v340_v45  ;;  %v394_v26 = vadd.f32 %v392_v1, %v341_v51 }
  0xc6   : > { %v364_v39 = vsel %vm307_vm8, %v359_v23, %v361_v22  ;;  %v388_v23 = vadd.f32 %v386_v63, %v313_v50 }
  0xc7   : > { %v368_v3 = vadd.f32 %v364_v39, %v283_v52 }
  0xc9   : > { %v402_v48 = vpop.permute.xlu1 %401  ;;  %v363_v40 = vpop.permute.xlu0 %362  ;;  %v399_v37 = vadd.f32 %v397_v6, %v368_v3  ;;  %v588_v3 = vstv %s1175_s16 }
  0xca   : > { %v365_v46 = vsel %vm307_vm8, %v361_v22, %v363_v40  ;;  %v387_v22 = vadd.f32 %v385_v60, %v312_v49 }
  0xcb   : > { %v369_v17 = vadd.f32 %v365_v46, %v284_v55 }
  0xcd   : > { %v406_v20 = vpop.permute.xlu1 %405  ;;  %v404_v21 = vpop.permute.xlu0 %403  ;;  %v400_v38 = vadd.f32 %v398_v16, %v369_v17  ;;  %v572_v16 = vstv %s1173_s15 }
  0xce   : > { %v408_v8 = vsel %vm407_vm9, %v402_v48, %v404_v21  ;;  %v409_v56 = vsel %vm407_vm9, %v404_v21, %v406_v20  ;;  %v537_v20 = vstv %s1183_s18 }
  0xcf   : > { %v412_v59 = vsel %vm1077_vm3, %v408_v8, 0.0  ;;  %v413_v27 = vsel %vm1082_vm4, %v409_v56, 0.0 }
  0xd0   : > { %v416_v30 = vmul.f32 %v415_v9, %v412_v59  ;;  %v417_v32 = vmul.f32 %v415_v9, %v413_v27  ;;  %v422_v33 = vmul.f32 %v421_v10, %v412_v59  ;;  %v423_v34 = vmul.f32 %v421_v10, %v413_v27 }
  0xd1   : > { %v428_v31 = vmul.f32 %v427_v11, %v412_v59  ;;  %v429_v41 = vmul.f32 %v427_v11, %v413_v27  ;;  %v489_v35 = vpop.permute.xlu1 %488  ;;  %v487_v36 = vpop.permute.xlu0 %486 }
  0xd2   : > { %v418_v9 = vadd.f32 %v416_v30, %v387_v22  ;;  %v419_v43 = vadd.f32 %v417_v32, %v388_v23  ;;  %v424_v10 = vadd.f32 %v422_v33, %v393_v57  ;;  %v425_v47 = vadd.f32 %v423_v34, %v394_v26 }
  0xd3   : > { %v430_v48 = vadd.f32 %v428_v31, %v399_v37  ;;  %v431_v40 = vadd.f32 %v429_v41, %v400_v38  ;;  %v493_v49 = vsel %vm492_vm10, %v487_v36, %v489_v35  ;;  %v911_v22 = vmov 1966171168  }
  0xd4   : > { %v448_v11 = vadd.f32 %v441_v12, %v418_v9  ;;  %v464_v50 = vadd.f32 %v457_v18, %v424_v10  ;;  %v497_v39 = vsel %vm1094_vm6, %v493_v49, 0.0  ;;  %v449_v46 = vadd.f32 %v445_v15, %v419_v43 }
  0xd5   : > { %v480_v12 = vadd.f32 %v473_v19, %v430_v48  ;;  %v501_v45 = vmul.f32 %v500_v13, %v497_v39  ;;  %v507_v18 = vmul.f32 %v506_v14, %v497_v39  ;;  %v513_v51 = vmul.f32 %v512_v24, %v497_v39  ;;  %v551_v52 = vpop.permute.xlu1 %550  ;;  %v491_v58 = vpop.permute.xlu0 %490 }
  0xd6   : > { %v552_v15 = vrot.slane %v551_v52, 1  ;;  %v553_v55 = vrot.slane %v551_v52, 2  ;;  %v465_v60 = vadd.f32 %v461_v25, %v425_v47  ;;  %v481_v19 = vadd.f32 %v477_v29, %v431_v40 }
  0xd7   : > { %v503_v63 = vadd.f32 %v501_v45, %v448_v11  ;;  %v509_v0 = vadd.f32 %v507_v18, %v464_v50  ;;  %v515_v1 = vadd.f32 %v513_v51, %v480_v12  ;;  %v494_v6 = vsel %vm492_vm10, %v489_v35, %v491_v58 }
  0xd8   : > { %v555_v17 = vsel %vm554_vm11, %v552_v15, %v553_v55  ;;  %v498_v61 = vsel %vm1098_vm7, %v494_v6, 0.0  ;;  %v531_v29 = vstv %s1181_s17  ;;  %v638_v23 = vunpack.c.l.s4 %v911_v22 }
  0xd9   : > { %v502_v62 = vmul.f32 %v500_v13, %v498_v61  ;;  %v520_v25 = vpop.permute.xlu1 %519  ;;  %v518_v21 = vpop.permute.xlu0 %517  ;;  %v508_v8 = vmul.f32 %v506_v14, %v498_v61  ;;  %v514_v56 = vmul.f32 %v512_v24, %v498_v61  ;;  %v543_v57 = vstv %s1185_s19 }
  0xda   : > { %v524_v26 = vsel %vm523_vm12, %v518_v21, %v520_v25  ;;  %v557_v59 = vmul.f32 %v555_v17, %v549_v28  ;;  %v573_v27 = vmul.f32 %v572_v16, %v555_v17  ;;  %v617_v13 = vstv %s1188_s20 }
  0xdb   : > { %v504_v30 = vadd.f32 %v502_v62, %v449_v46  ;;  %v510_v32 = vadd.f32 %v508_v8, %v465_v60  ;;  %v623_v33 = vstv %s1201_s21  ;;  %v629_v34 = vstv %s1203_s22 }
  0xdc   : > { %v589_v37 = vmul.f32 %v588_v3, %v555_v17  ;;  %v516_v38 = vadd.f32 %v514_v56, %v481_v19  ;;  %v528_v31 = vsel %vm1077_vm3, %v524_v26, 0.0  ;;  %v639_v24 = vunpack.c.0.s8 %v638_v23 }
  0xdd   : > { %v604_v14 = vpop.permute.xlu1 %603  ;;  %v522_v41 = vpop.permute.xlu0 %521  ;;  %v532_v35 = vmul.f32 %v531_v29, %v528_v31  ;;  %v538_v36 = vmul.f32 %v537_v20, %v528_v31  ;;  %v544_v9 = vmul.f32 %v543_v57, %v528_v31  ;;  %v562_v43 = vrot.slane %v557_v59, %v1006_v5 }
  0xde   : > { %v525_v28 = vsel %vm523_vm12, %v520_v25, %v522_v41  ;;  %v566_v10 = vrot.slane %v557_v59, %v1010_v7  ;;  %v578_v47 = vrot.slane %v573_v27, %v1006_v5  ;;  %v582_v50 = vrot.slane %v573_v27, %v1010_v7 }
  0xdf   : > { %v529_v48 = vsel %vm1082_vm4, %v525_v28, 0.0  ;;  %v534_v40 = vadd.f32 %v532_v35, %v503_v63  ;;  %v540_v42 = vadd.f32 %v538_v36, %v509_v0  ;;  %v546_v49 = vadd.f32 %v544_v9, %v515_v1 }
  0xe0   : > { %v533_v11 = vmul.f32 %v531_v29, %v529_v48  ;;  %v594_v39 = vrot.slane %v589_v37, %v1006_v5  ;;  %v539_v46 = vmul.f32 %v537_v20, %v529_v48  ;;  %v545_v12 = vmul.f32 %v543_v57, %v529_v48 }
  0xe1   : > { %v608_v45 = vpop.permute.xlu1 %607  ;;  %v606_v18 = vpop.permute.xlu0 %605  ;;  %v598_v51 = vrot.slane %v589_v37, %v1010_v7  ;;  %v569_v58 = vadd.f32 %v562_v43, %v534_v40  ;;  %v585_v15 = vadd.f32 %v578_v47, %v540_v42  ;;  %v642_v29 = vsub.s32 %v639_v24, %v1003_v4 }
  0xe2   : > { %v535_v52 = vadd.f32 %v533_v11, %v504_v30  ;;  %v541_v55 = vadd.f32 %v539_v46, %v510_v32  ;;  %v547_v44 = vadd.f32 %v545_v12, %v516_v38  ;;  %v610_v60 = vsel %vm609_vm13, %v604_v14, %v606_v18 }
  0xe3   : > { %v611_v19 = vsel %vm609_vm13, %v606_v18, %v608_v45  ;;  %v601_v0 = vadd.f32 %v594_v39, %v546_v49  ;;  %v614_v5 = vsel %vm1094_vm6, %v610_v60, 0.0 }
  0xe4   : > { %v570_v63 = vadd.f32 %v566_v10, %v535_v52  ;;  %v615_v1 = vsel %vm1098_vm7, %v611_v19, 0.0  ;;  %v586_v6 = vadd.f32 %v582_v50, %v541_v55  ;;  %v602_v7 = vadd.f32 %v598_v51, %v547_v44 }
  0xe5   : > { %v618_v16 = vmul.f32 %v617_v13, %v614_v5  ;;  %v619_v3 = vmul.f32 %v617_v13, %v615_v1  ;;  %v624_v17 = vmul.f32 %v623_v33, %v614_v5  ;;  %v625_v61 = vmul.f32 %v623_v33, %v615_v1 }
  0xe6   : > { %v630_v62 = vmul.f32 %v629_v34, %v614_v5  ;;  %v631_v25 = vmul.f32 %v629_v34, %v615_v1 }
  0xe7   : > { %v620_v20 = vadd.f32 %v618_v16, %v569_v58  ;;  %v621_v21 = vadd.f32 %v619_v3, %v570_v63  ;;  %v626_v22 = vadd.f32 %v624_v17, %v585_v15  ;;  %v627_v23 = vadd.f32 %v625_v61, %v586_v6 }
  0xe8   : > { %v632_v53 = vadd.f32 %v630_v62, %v601_v0  ;;  %v633_v8 = vadd.f32 %v631_v25, %v602_v7 }
  0xe9   : > { %v636_v54 = vcombine.low %v620_v20, %v621_v21  ;;  %v655_v56 = vcombine.low %v626_v22, %v627_v23 }
  0xea   : > { %v675_v57 = vcombine.low %v632_v53, %v633_v8 }
  0xeb   : > { %v643_v26 = vrot.slane %v636_v54, %v642_v29  ;;  %v662_v59 = vrot.slane %v655_v56, %v642_v29 }
  0xec   : > { %v682_v27 = vrot.slane %v675_v57, %v642_v29 }
  0xed   : > { %v650_v13 = vrot.slane %v643_v26, %v642_v29  ;;  %v669_v30 = vrot.slane %v662_v59, %v642_v29 }
  0xee   : > { %v689_v4 = vrot.slane %v682_v27, %v642_v29 }
  0xef   : > { %652 = vst.msk [vmem:[%s192_s26] ss:$4 sm:$0x3] %vm993_vm1, %v650_v13  ;;  %812 = vst.msk [vmem:[%s192_s26 + $0x1] ss:$4 sm:$0x3] %vm993_vm1, %v669_v30 }
  0xf0   : > { %813 = vst.msk [vmem:[%s192_s26 + $0x2] ss:$4 sm:$0x3] %vm993_vm1, %v689_v4 }
  0xf1 PF: > { %s15_s12 = sadd.s32 1, %s898_s12  }
  0xf2   : > { %p12_p2 = scmp.ge.s32.totalorder %s15_s12, 4  }
  0xf4   :  { %14 = sbr.rel (!%p12_p2) target bundleno = 2 (0x2), region = 74 }
  0xfb   :  { %714 = vsyncpa [#allocation4], 1 }
  0xfc   :  { %716 = vsyncpa [#allocation4 + $0x1], 1 }
  0xfd   :  { %717 = vsyncpa [#allocation5], 1 }
  0xfe   :  { %719 = vsyncpa [#allocation5 + $0x1], 1 }

</bundles_post_ra>
